<compile_context>
chip_gen: v7x
topology: tpu7x:2x2x1
jax: 0.10.0
libtpu: 0.0.40
codegen_flags: <defaults>
</compile_context>

<pallas_src>
import functools

import jax
import jax.numpy as jnp
import numpy as np
from jax.experimental import pallas as pl
from jax.experimental.pallas import tpu as pltpu


# ----------------------------- Pallas kernel --------------------------------
def _vae_kernel(hidden_dim, input_dim, latent_dim,
                x_ref, eps_ref,
                w_ih_e_ref, b_e_ref,      # encoder LSTM  W_ih^T (D,3H) [i|o|g], b (1,3H)
                w_ml_ref, b_ml_ref,       # fused mu|logvar head (H,2L), (1,2L)
                w_d1_ref, b_d1_ref,       # decoder Linear (L,H), (1,H)
                w_ih_d_ref, b_d_ref,      # decoder LSTM  W_ih^T (H,3D) [i|o|g], b (1,3D)
                out_ref):                 # packed (B, D+2L) = [recon | mu | logvar]
    H, D, L = hidden_dim, input_dim, latent_dim
    wdt = w_ih_e_ref.dtype               # matmul operand dtype (f32 or bf16)

    x = x_ref[...]

    # ---- encoder LSTM cell (seq_len = 1, h0 = c0 = 0) -----------------------
    gates = jnp.dot(x.astype(wdt), w_ih_e_ref[...],
                    preferred_element_type=jnp.float32) + b_e_ref[...]
    sig = jax.nn.sigmoid(gates[:, :2 * H])          # [i | o] in one EUP pass
    i_g = sig[:, :H]
    o_g = sig[:, H:2 * H]
    g_g = jnp.tanh(gates[:, 2 * H:3 * H])
    h = o_g * jnp.tanh(i_g * g_g)                   # == hd.squeeze(0)

    # ---- fused mu / logvar head ---------------------------------------------
    ml = jnp.dot(h.astype(wdt), w_ml_ref[...],
                 preferred_element_type=jnp.float32) + b_ml_ref[...]
    mu = ml[:, :L]
    logvar = ml[:, L:]

    # ---- reparameterization (eps supplied from host for determinism) --------
    z = mu + eps_ref[...] * jnp.exp(0.5 * logvar)

    # ---- decoder Linear ------------------------------------------------------
    d1 = jnp.dot(z.astype(wdt), w_d1_ref[...],
                 preferred_element_type=jnp.float32) + b_d1_ref[...]

    # ---- decoder LSTM cell (seq_len = 1, h0 = c0 = 0) ------------------------
    gates2 = jnp.dot(d1.astype(wdt), w_ih_d_ref[...],
                     preferred_element_type=jnp.float32) + b_d_ref[...]
    sig2 = jax.nn.sigmoid(gates2[:, :2 * D])        # [i | o]
    i2 = sig2[:, :D]
    o2 = sig2[:, D:2 * D]
    g2 = jnp.tanh(gates2[:, 2 * D:3 * D])
    recon = o2 * jnp.tanh(i2 * g2)                  # == out.squeeze(1)

    # lane-dense packed output: one writeback DMA instead of three narrow ones
    out_ref[...] = jnp.concatenate([recon, mu, logvar], axis=-1)


# ------------------------------ wrapper --------------------------------------
def vae_forward(x, eps, params):
    B, D = x.shape
    L = eps.shape[1]
    H = params["w_d1"].shape[1]

    # Batch tiling: only split when B is big enough that multiple grid steps
    # can shard across the two v7x TensorCores; otherwise a single step avoids
    # per-step pipeline overhead (v5e/v6e have one TC anyway).
    if B >= 256 and B % 128 == 0:
        TB = 128
    else:
        TB = B

    kernel = functools.partial(_vae_kernel, H, D, L)

    const = lambda b: (0, 0)     # weights/biases: same block every grid step
    batched = lambda b: (b, 0)   # per-batch-tile blocks

    in_specs = [
        pl.BlockSpec((TB, D), batched),        # x
        pl.BlockSpec((TB, L), batched),        # eps
        pl.BlockSpec((D, 3 * H), const),       # encoder LSTM W_ih^T [i|o|g]
        pl.BlockSpec((1, 3 * H), const),       # encoder LSTM b_ih + b_hh
        pl.BlockSpec((H, 2 * L), const),       # fused [mu|logvar] W^T
        pl.BlockSpec((1, 2 * L), const),       # fused [mu|logvar] b
        pl.BlockSpec((L, H), const),           # decoder_l1 W^T
        pl.BlockSpec((1, H), const),           # decoder_l1 b
        pl.BlockSpec((H, 3 * D), const),       # decoder LSTM W_ih^T [i|o|g]
        pl.BlockSpec((1, 3 * D), const),       # decoder LSTM b_ih + b_hh
    ]
    out_specs = pl.BlockSpec((TB, D + 2 * L), batched)
    out_shape = jax.ShapeDtypeStruct((B, D + 2 * L), jnp.float32)

    packed = pl.pallas_call(
        kernel,
        grid=(B // TB,),
        in_specs=in_specs,
        out_specs=out_specs,
        out_shape=out_shape,
        compiler_params=pltpu.CompilerParams(
            dimension_semantics=("parallel",)),
    )(x, eps,
      params["w_ih_e"], params["b_e"],
      params["w_mulv"], params["b_mulv"],
      params["w_d1"], params["b_d1"],
      params["w_ih_d"], params["b_d"])

    recon = packed[:, :D]
    mu = packed[:, D:D + L]
    logvar = packed[:, D + L:]
    return recon, mu, logvar


# ---------------------- pure-JAX reference (for checking) --------------------
def vae_reference(x, eps, p):
    H = p["w_d1"].shape[1]
    D = x.shape[1]
    L = eps.shape[1]
    wdt = p["w_ih_e"].dtype
    dot = lambda a, w: jnp.dot(a.astype(wdt), w,
                               preferred_element_type=jnp.float32)
    g = dot(x, p["w_ih_e"]) + p["b_e"]
    i = jax.nn.sigmoid(g[:, :H]); o = jax.nn.sigmoid(g[:, H:2 * H])
    gg = jnp.tanh(g[:, 2 * H:3 * H])
    h = o * jnp.tanh(i * gg)
    ml = dot(h, p["w_mulv"]) + p["b_mulv"]
    mu, logvar = ml[:, :L], ml[:, L:]
    z = mu + eps * jnp.exp(0.5 * logvar)
    d1 = dot(z, p["w_d1"]) + p["b_d1"]
    g2 = dot(d1, p["w_ih_d"]) + p["b_d"]
    i2 = jax.nn.sigmoid(g2[:, :D]); o2 = jax.nn.sigmoid(g2[:, D:2 * D])
    gg2 = jnp.tanh(g2[:, 2 * D:3 * D])
    return o2 * jnp.tanh(i2 * gg2), mu, logvar


# ------------------------------ parameter init -------------------------------
def init_params(key, input_dim, hidden_dim, latent_dim, weight_dtype=jnp.float32):
    """PyTorch-style uniform init, stored in the kernel's packed layout.

    Conversion from an existing nn.LSTM: take the i/o/g row blocks of W_ih
    (drop the f block), transpose, concatenate -> (in, 3*out); fold b_ih+b_hh
    the same way. mu/logvar Linear weights are transposed and concatenated.
    """
    D, H, L = input_dim, hidden_dim, latent_dim
    ks = jax.random.split(key, 12)
    u = lambda k, shape, fan: jax.random.uniform(
        k, shape, jnp.float32, -1.0 / np.sqrt(fan), 1.0 / np.sqrt(fan))
    p = {
        # gate order [i | o | g]; forget-gate columns pruned (c0 == 0)
        "w_ih_e": u(ks[0], (D, 3 * H), H),
        "b_e":    u(ks[1], (1, 3 * H), H) + u(ks[2], (1, 3 * H), H),
        "w_mulv": jnp.concatenate([u(ks[3], (H, L), H),
                                   u(ks[5], (H, L), H)], axis=1),
        "b_mulv": jnp.concatenate([u(ks[4], (1, L), H),
                                   u(ks[6], (1, L), H)], axis=1),
        "w_d1":   u(ks[7], (L, H), L),
        "b_d1":   u(ks[8], (1, H), L),
        "w_ih_d": u(ks[9], (H, 3 * D), D),
        "b_d":    u(ks[10], (1, 3 * D), D) + u(ks[11], (1, 3 * D), D),
    }
    # Weights may be stored bf16 (halves weight HBM->VMEM DMA, bf16 MXU rate on
    # v6e/v7x); biases stay f32 — they are added post-accumulation on the VPU.
    weight_names = {"w_ih_e", "w_mulv", "w_d1", "w_ih_d"}
    return {k: (v.astype(weight_dtype) if k in weight_names else v)
            for k, v in p.items()}


if __name__ == "__main__":
    B, D, H, L = 8, 16, 32, 8  # batch, input_dim, hidden_dim, latent_dim
    key = jax.random.PRNGKey(0)
    kx, keps, kp = jax.random.split(key, 3)

    x = jax.random.normal(kx, (B, D), jnp.float32)
    eps = jax.random.normal(keps, (B, L), jnp.float32)  # reparam noise
    # TODO(synk): torch.randn_like noise is supplied as a host eps input for
    # determinism; could be generated in-kernel via pltpu.prng_random_bits.

    # --- f32 weights: exact-path check ---------------------------------------
    p32 = init_params(kp, D, H, L, jnp.float32)
    recon, mu, logvar = jax.block_until_ready(vae_forward(x, eps, p32))
    r_ref, mu_ref, lv_ref = vae_reference(x, eps, p32)
    np.testing.assert_allclose(np.asarray(recon), np.asarray(r_ref),
                               atol=1e-5, rtol=1e-5)
    np.testing.assert_allclose(np.asarray(mu), np.asarray(mu_ref),
                               atol=1e-5, rtol=1e-5)
    np.testing.assert_allclose(np.asarray(logvar), np.asarray(lv_ref),
                               atol=1e-5, rtol=1e-5)

    # --- bf16 weights (v6e/v7x DMA/MXU optimization): looser check -----------
    p16 = init_params(kp, D, H, L, jnp.bfloat16)
    recon16, mu16, lv16 = jax.block_until_ready(vae_forward(x, eps, p16))
    r16, m16, l16 = vae_reference(x, eps, p16)
    np.testing.assert_allclose(np.asarray(recon16), np.asarray(r16),
                               atol=2e-2, rtol=2e-2)
    np.testing.assert_allclose(np.asarray(mu16), np.asarray(m16),
                               atol=2e-2, rtol=2e-2)
    np.testing.assert_allclose(np.asarray(lv16), np.asarray(l16),
                               atol=2e-2, rtol=2e-2)

    print("KERNEL_OK")
</pallas_src>

<mosaic_0001>
module attributes {stable_mosaic.version = 11 : i64} {
  func.func @_vae_kernel(%arg0: i32, %arg1: memref<8x16xf32, #tpu.memory_space<vmem>>, %arg2: memref<8x8xf32, #tpu.memory_space<vmem>>, %arg3: memref<16x96xf32, #tpu.memory_space<vmem>>, %arg4: memref<1x96xf32, #tpu.memory_space<vmem>>, %arg5: memref<32x16xf32, #tpu.memory_space<vmem>>, %arg6: memref<1x16xf32, #tpu.memory_space<vmem>>, %arg7: memref<8x32xf32, #tpu.memory_space<vmem>>, %arg8: memref<1x32xf32, #tpu.memory_space<vmem>>, %arg9: memref<32x48xf32, #tpu.memory_space<vmem>>, %arg10: memref<1x48xf32, #tpu.memory_space<vmem>>, %arg11: memref<8x32xf32, #tpu.memory_space<vmem>>) attributes {dimension_semantics = [#tpu.dimension_semantics<parallel>], iteration_bounds = array<i64: 1>, scalar_prefetch = 0 : i64, scratch_operands = 0 : i64, tpu.core_type = #tpu.core_type<tc>, window_params = [{transform_indices = @transform_0, window_bounds = array<i64: 8, 16>}, {transform_indices = @transform_1, window_bounds = array<i64: 8, 8>}, {pipeline_mode = #tpu.pipeline_mode<synchronous>, transform_indices = @transform_2, window_bounds = array<i64: 16, 96>}, {pipeline_mode = #tpu.pipeline_mode<synchronous>, transform_indices = @transform_3, window_bounds = array<i64: 1, 96>}, {pipeline_mode = #tpu.pipeline_mode<synchronous>, transform_indices = @transform_4, window_bounds = array<i64: 32, 16>}, {pipeline_mode = #tpu.pipeline_mode<synchronous>, transform_indices = @transform_5, window_bounds = array<i64: 1, 16>}, {pipeline_mode = #tpu.pipeline_mode<synchronous>, transform_indices = @transform_6, window_bounds = array<i64: 8, 32>}, {pipeline_mode = #tpu.pipeline_mode<synchronous>, transform_indices = @transform_7, window_bounds = array<i64: 1, 32>}, {pipeline_mode = #tpu.pipeline_mode<synchronous>, transform_indices = @transform_8, window_bounds = array<i64: 32, 48>}, {pipeline_mode = #tpu.pipeline_mode<synchronous>, transform_indices = @transform_9, window_bounds = array<i64: 1, 48>}, {transform_indices = @transform_10, window_bounds = array<i64: 8, 32>}]} {
    %c0 = arith.constant 0 : index
    %c0_0 = arith.constant 0 : index
    %0 = vector.load %arg1[%c0, %c0_0] : memref<8x16xf32, #tpu.memory_space<vmem>>, vector<8x16xf32>
    %c0_1 = arith.constant 0 : index
    %c0_2 = arith.constant 0 : index
    %1 = vector.load %arg3[%c0_1, %c0_2] : memref<16x96xf32, #tpu.memory_space<vmem>>, vector<16x96xf32>
    %cst = arith.constant dense<0.000000e+00> : vector<8x96xf32>
    %2 = tpu.matmul %0, %1, %cst {dimension_numbers = #tpu.dot_dimension_numbers<[1], [0], [0], [1], [0, 0, 1, 1], [], []>} : vector<8x16xf32>, vector<16x96xf32>, vector<8x96xf32> -> vector<8x96xf32>
    %c0_3 = arith.constant 0 : index
    %c0_4 = arith.constant 0 : index
    %3 = vector.load %arg4[%c0_3, %c0_4] : memref<1x96xf32, #tpu.memory_space<vmem>>, vector<1x96xf32>
    %4 = vector.broadcast %3 : vector<1x96xf32> to vector<8x96xf32>
    %5 = arith.addf %2, %4 : vector<8x96xf32>
    %6 = vector.extract_strided_slice %5 {offsets = [0, 0], sizes = [8, 64], strides = [1, 1]} : vector<8x96xf32> to vector<8x64xf32>
    %7 = arith.negf %6 : vector<8x64xf32>
    %8 = math.exp %7 : vector<8x64xf32>
    %cst_5 = arith.constant 1.000000e+00 : f32
    %9 = vector.broadcast %cst_5 : f32 to vector<8x64xf32>
    %10 = arith.addf %9, %8 : vector<8x64xf32>
    %11 = arith.divf %9, %10 : vector<8x64xf32>
    %12 = vector.extract_strided_slice %11 {offsets = [0, 0], sizes = [8, 32], strides = [1, 1]} : vector<8x64xf32> to vector<8x32xf32>
    %13 = vector.extract_strided_slice %11 {offsets = [0, 32], sizes = [8, 32], strides = [1, 1]} : vector<8x64xf32> to vector<8x32xf32>
    %14 = vector.extract_strided_slice %5 {offsets = [0, 64], sizes = [8, 32], strides = [1, 1]} : vector<8x96xf32> to vector<8x32xf32>
    %15 = math.tanh %14 : vector<8x32xf32>
    %16 = arith.mulf %12, %15 : vector<8x32xf32>
    %17 = math.tanh %16 : vector<8x32xf32>
    %18 = arith.mulf %13, %17 : vector<8x32xf32>
    %c0_6 = arith.constant 0 : index
    %c0_7 = arith.constant 0 : index
    %19 = vector.load %arg5[%c0_6, %c0_7] : memref<32x16xf32, #tpu.memory_space<vmem>>, vector<32x16xf32>
    %cst_8 = arith.constant dense<0.000000e+00> : vector<8x16xf32>
    %20 = tpu.matmul %18, %19, %cst_8 {dimension_numbers = #tpu.dot_dimension_numbers<[1], [0], [0], [1], [0, 0, 1, 1], [], []>} : vector<8x32xf32>, vector<32x16xf32>, vector<8x16xf32> -> vector<8x16xf32>
    %c0_9 = arith.constant 0 : index
    %c0_10 = arith.constant 0 : index
    %21 = vector.load %arg6[%c0_9, %c0_10] : memref<1x16xf32, #tpu.memory_space<vmem>>, vector<1x16xf32>
    %22 = vector.broadcast %21 : vector<1x16xf32> to vector<8x16xf32>
    %23 = arith.addf %20, %22 : vector<8x16xf32>
    %24 = vector.extract_strided_slice %23 {offsets = [0, 0], sizes = [8, 8], strides = [1, 1]} : vector<8x16xf32> to vector<8x8xf32>
    %25 = vector.extract_strided_slice %23 {offsets = [0, 8], sizes = [8, 8], strides = [1, 1]} : vector<8x16xf32> to vector<8x8xf32>
    %c0_11 = arith.constant 0 : index
    %c0_12 = arith.constant 0 : index
    %26 = vector.load %arg2[%c0_11, %c0_12] : memref<8x8xf32, #tpu.memory_space<vmem>>, vector<8x8xf32>
    %cst_13 = arith.constant 5.000000e-01 : f32
    %27 = vector.broadcast %cst_13 : f32 to vector<8x8xf32>
    %28 = arith.mulf %27, %25 : vector<8x8xf32>
    %29 = math.exp %28 : vector<8x8xf32>
    %30 = arith.mulf %26, %29 : vector<8x8xf32>
    %31 = arith.addf %24, %30 : vector<8x8xf32>
    %c0_14 = arith.constant 0 : index
    %c0_15 = arith.constant 0 : index
    %32 = vector.load %arg7[%c0_14, %c0_15] : memref<8x32xf32, #tpu.memory_space<vmem>>, vector<8x32xf32>
    %cst_16 = arith.constant dense<0.000000e+00> : vector<8x32xf32>
    %33 = tpu.matmul %31, %32, %cst_16 {dimension_numbers = #tpu.dot_dimension_numbers<[1], [0], [0], [1], [0, 0, 1, 1], [], []>} : vector<8x8xf32>, vector<8x32xf32>, vector<8x32xf32> -> vector<8x32xf32>
    %c0_17 = arith.constant 0 : index
    %c0_18 = arith.constant 0 : index
    %34 = vector.load %arg8[%c0_17, %c0_18] : memref<1x32xf32, #tpu.memory_space<vmem>>, vector<1x32xf32>
    %35 = vector.broadcast %34 : vector<1x32xf32> to vector<8x32xf32>
    %36 = arith.addf %33, %35 : vector<8x32xf32>
    %c0_19 = arith.constant 0 : index
    %c0_20 = arith.constant 0 : index
    %37 = vector.load %arg9[%c0_19, %c0_20] : memref<32x48xf32, #tpu.memory_space<vmem>>, vector<32x48xf32>
    %cst_21 = arith.constant dense<0.000000e+00> : vector<8x48xf32>
    %38 = tpu.matmul %36, %37, %cst_21 {dimension_numbers = #tpu.dot_dimension_numbers<[1], [0], [0], [1], [0, 0, 1, 1], [], []>} : vector<8x32xf32>, vector<32x48xf32>, vector<8x48xf32> -> vector<8x48xf32>
    %c0_22 = arith.constant 0 : index
    %c0_23 = arith.constant 0 : index
    %39 = vector.load %arg10[%c0_22, %c0_23] : memref<1x48xf32, #tpu.memory_space<vmem>>, vector<1x48xf32>
    %40 = vector.broadcast %39 : vector<1x48xf32> to vector<8x48xf32>
    %41 = arith.addf %38, %40 : vector<8x48xf32>
    %42 = vector.extract_strided_slice %41 {offsets = [0, 0], sizes = [8, 32], strides = [1, 1]} : vector<8x48xf32> to vector<8x32xf32>
    %43 = arith.negf %42 : vector<8x32xf32>
    %44 = math.exp %43 : vector<8x32xf32>
    %cst_24 = arith.constant 1.000000e+00 : f32
    %45 = vector.broadcast %cst_24 : f32 to vector<8x32xf32>
    %46 = arith.addf %45, %44 : vector<8x32xf32>
    %47 = arith.divf %45, %46 : vector<8x32xf32>
    %48 = vector.extract_strided_slice %47 {offsets = [0, 0], sizes = [8, 16], strides = [1, 1]} : vector<8x32xf32> to vector<8x16xf32>
    %49 = vector.extract_strided_slice %47 {offsets = [0, 16], sizes = [8, 16], strides = [1, 1]} : vector<8x32xf32> to vector<8x16xf32>
    %50 = vector.extract_strided_slice %41 {offsets = [0, 32], sizes = [8, 16], strides = [1, 1]} : vector<8x48xf32> to vector<8x16xf32>
    %51 = math.tanh %50 : vector<8x16xf32>
    %52 = arith.mulf %48, %51 : vector<8x16xf32>
    %53 = math.tanh %52 : vector<8x16xf32>
    %54 = arith.mulf %49, %53 : vector<8x16xf32>
    %55 = tpu.concatenate %54, %24, %25 in 1 : vector<8x16xf32>, vector<8x8xf32>, vector<8x8xf32> -> vector<8x32xf32>
    %c0_25 = arith.constant 0 : index
    %c0_26 = arith.constant 0 : index
    %56 = vector.load %arg11[%c0_25, %c0_26] : memref<8x32xf32, #tpu.memory_space<vmem>>, vector<8x32xf32>
    tpu.vector_store %arg11[%c0_25, %c0_26], %55 {strides = array<i32>} : memref<8x32xf32, #tpu.memory_space<vmem>>, vector<8x32xf32>,
    return
  }
  func.func @transform_0(%arg0: i32) -> (i32, i32) {
    %c0_i32 = arith.constant 0 : i32
    %c0_i32_0 = arith.constant 0 : i32
    return %arg0, %c0_i32 : i32, i32
  }
  func.func @transform_1(%arg0: i32) -> (i32, i32) {
    %c0_i32 = arith.constant 0 : i32
    %c0_i32_0 = arith.constant 0 : i32
    return %arg0, %c0_i32 : i32, i32
  }
  func.func @transform_2(%arg0: i32) -> (i32, i32) {
    %c0_i32 = arith.constant 0 : i32
    %c0_i32_0 = arith.constant 0 : i32
    %c0_i32_1 = arith.constant 0 : i32
    return %c0_i32, %c0_i32_0 : i32, i32
  }
  func.func @transform_3(%arg0: i32) -> (i32, i32) {
    %c0_i32 = arith.constant 0 : i32
    %c0_i32_0 = arith.constant 0 : i32
    %c0_i32_1 = arith.constant 0 : i32
    return %c0_i32, %c0_i32_0 : i32, i32
  }
  func.func @transform_4(%arg0: i32) -> (i32, i32) {
    %c0_i32 = arith.constant 0 : i32
    %c0_i32_0 = arith.constant 0 : i32
    %c0_i32_1 = arith.constant 0 : i32
    return %c0_i32, %c0_i32_0 : i32, i32
  }
  func.func @transform_5(%arg0: i32) -> (i32, i32) {
    %c0_i32 = arith.constant 0 : i32
    %c0_i32_0 = arith.constant 0 : i32
    %c0_i32_1 = arith.constant 0 : i32
    return %c0_i32, %c0_i32_0 : i32, i32
  }
  func.func @transform_6(%arg0: i32) -> (i32, i32) {
    %c0_i32 = arith.constant 0 : i32
    %c0_i32_0 = arith.constant 0 : i32
    %c0_i32_1 = arith.constant 0 : i32
    return %c0_i32, %c0_i32_0 : i32, i32
  }
  func.func @transform_7(%arg0: i32) -> (i32, i32) {
    %c0_i32 = arith.constant 0 : i32
    %c0_i32_0 = arith.constant 0 : i32
    %c0_i32_1 = arith.constant 0 : i32
    return %c0_i32, %c0_i32_0 : i32, i32
  }
  func.func @transform_8(%arg0: i32) -> (i32, i32) {
    %c0_i32 = arith.constant 0 : i32
    %c0_i32_0 = arith.constant 0 : i32
    %c0_i32_1 = arith.constant 0 : i32
    return %c0_i32, %c0_i32_0 : i32, i32
  }
  func.func @transform_9(%arg0: i32) -> (i32, i32) {
    %c0_i32 = arith.constant 0 : i32
    %c0_i32_0 = arith.constant 0 : i32
    %c0_i32_1 = arith.constant 0 : i32
    return %c0_i32, %c0_i32_0 : i32, i32
  }
  func.func @transform_10(%arg0: i32) -> (i32, i32) {
    %c0_i32 = arith.constant 0 : i32
    %c0_i32_0 = arith.constant 0 : i32
    return %arg0, %c0_i32 : i32, i32
  }
}

</mosaic_0001>

<bundles_post_ra>
// kernel: tpu_custom_call.1
= control target key start
LH: loop header
LB: loop body
LE: loop exit
PB: predicated region body
PF: predicated region fallthrough
CT: control target
= control target key end

     0   :  { %15 = vsyncpa [#allocation3], 0  ;;  %s768_s0 = inlined_call_operand.vmem [shape: f32[8,16], index: 0, kind: input, shape index: {}]   ;;  %s769_s1 = inlined_call_operand.hbm [shape: f32[8,8], index: 1, kind: input, shape index: {}]   ;;  %s770_s2 = inlined_call_operand.vmem [shape: f32[16,96], index: 2, kind: input, shape index: {}]   ;;  %s771_s3 = inlined_call_operand.vmem [shape: f32[1,96], index: 3, kind: input, shape index: {}]   ;;  %s772_s4 = inlined_call_operand.vmem [shape: f32[32,16], index: 4, kind: input, shape index: {}]   ;;  %s773_s5 = inlined_call_operand.vmem [shape: f32[1,16], index: 5, kind: input, shape index: {}]   ;;  %s774_s6 = inlined_call_operand.vmem [shape: f32[8,32], index: 6, kind: input, shape index: {}]   ;;  %s775_s7 = inlined_call_operand.vmem [shape: f32[1,32], index: 7, kind: input, shape index: {}]   ;;  %s776_s8 = inlined_call_operand.vmem [shape: f32[32,48], index: 8, kind: input, shape index: {}]   ;;  %s777_s9 = inlined_call_operand.vmem [shape: f32[1,48], index: 9, kind: input, shape index: {}]   ;;  %s778_s10 = inlined_call_operand.hbm [shape: f32[8,32], index: 10, kind: output, shape index: {}]  }
   0x1   :  { %16 = vsyncpa [#allocation4], 0  ;;  %s609_s13 = smov [#allocation2]   ;;  %s561_s17 = scalar_lea.hbm %s769_s1, 128 }
   0x2   :  { %s25_s14 = sshll.u32 %s609_s13, 4  ;;  %p562_p0 = scmp.ne.s32.totalorder %s769_s1, %s561_s17  ;;  %s26_s14 = int_to_ptr.vmem [resolvable:$true] %s25_s14 }
   0x3   :  { %p565_p1 = scmp.lt.u32.totalorder %s561_s17, %s769_s1 }
   0x5   :  { %p567_p2 = pnand %p565_p1, %p562_p0 }
   0x7   :  { %570 = shalt.err (!%p567_p2)
}
   0x8   :  { %s571_s22 = scalar_lea.vmem %s26_s14, 128  ;;  %p576_p4 = scmp.lt.s32.totalorder %s26_s14, %s26_s14 }
   0x9   :  { %p572_p3 = scmp.ne.s32.totalorder %s26_s14, %s571_s22  ;;  %p577_p5 = scmp.lt.s32.totalorder %s571_s22, %s571_s22 }
   0xb   :  { %p578_p6 = por %p577_p5, %p576_p4 }
   0xd   :  { %p579_p7 = pnand %p578_p6, %p572_p3 }
   0xf   :  { %582 = shalt.err (!%p579_p7)
}
  0x10   :  { %28 = dma.hbm_to_vmem [thread:$0]  %s769_s1, 128, %s26_s14, [#allocation3]  }
  0x11   :  { %605 = dma.done.wait [#allocation3], 128  }
  0x12   :  { %606 = vsyncadd [#allocation3], 4294967168  ;;  %v610_v0 = vmov 0.0|0.0   ;;  %vm611_vm0 = vmmov 0   ;;  %v612_v1 = vmov 0.0   ;;  %v49_v2 = vld [vmem:[%s770_s2] sm:$0xff] }
  0x13   :  { %517 = vmatprep.subr.bf16.mxu1 %v610_v0  ;;  %487 = vmatprep.mubr.msk.f32.mxu1 %vm611_vm0, %v612_v1  ;;  %v50_v3 = vld [vmem:[%s770_s2 + $0x8] sm:$0xff]  ;;  %v48_v5 = vld [vmem:[%s768_s0] sm:$0xff]  ;;  %vm58_vm1 = vcmask 130048   ;;  %s613_s2 = smov 64   ;;  %v152_v19 = vld [vmem:[%s772_s4 + $0x10] sm:$0xff]  ;;  %s614_s18 = smov 32  }
  0x14   :  { %501 = vmatprep.subr.mxu0 %v612_v1  ;;  %503 = vmatprep.mubr.msk.f32.mxu0 %vm611_vm0, %v612_v1  ;;  %v518_v4 = vpack.c.bf16 %v50_v3, %v49_v2  ;;  %v458_v6 = vld [vmem:[%s771_s3] ss:$0 sm:$0xff]  ;;  %v151_v18 = vld [vmem:[%s772_s4 + $0x8] sm:$0xff]  ;;  %v153_v21 = vld [vmem:[%s772_s4 + $0x18] sm:$0xff]  ;;  %s615_s19 = smov 96   ;;  %vm164_vm2 = vcmask 261120  }
  0x15   :  { %v150_v17 = vld [vmem:[%s772_s4] sm:$0xff]  ;;  %v524_v22 = vpack.c.bf16 %v153_v21, %v152_v19  ;;  %s616_s23 = smov 120   ;;  %v330_v37 = vld [vmem:[%s776_s8 + $0x8] sm:$0xff]  ;;  %vm255_vm3 = vcmask 64512   ;;  %v331_v42 = vld [vmem:[%s776_s8 + $0x10] sm:$0xff]  ;;  %vm440_vm4 = vcmask 195584  }
  0x16   :  { %519 = vmatpush3.bf16.msra.mxu1 %v518_v4  ;;  %v521_v20 = vpack.c.bf16 %v151_v18, %v150_v17  ;;  %v461_v27 = vld [vmem:[%s773_s5] ss:$0 sm:$0xff]  ;;  %v332_v43 = vld [vmem:[%s776_s8 + $0x18] sm:$0xff] }
  0x17   :  { %520 = vmatprep.subr.bf16.mxu1 %v610_v0  ;;  %v247_v33 = vld [vmem:[%s774_s6] sm:$0xff]  ;;  %v530_v44 = vpack.c.bf16 %v332_v43, %v331_v42 }
  0x18   :  { %502 = vmatpush3.msra.mxu0 %v247_v33  ;;  %v237_v35 = vld [vmem:[#allocation2] sm:$0xff] }
  0x19   :  { %488 = vmatmul.mubr.msk.f32.vlgmr.msra.gmra.mrb[0].mxu1 %vm58_vm1, %v48_v5  ;;  %526 = vmatprep.subr.bf16.mxu0 %v610_v0  ;;  %v329_v36 = vld [vmem:[%s776_s8] sm:$0xff]  ;;  %s618_s8 = smov 112  }
  0x1a   :  { %498 = vmatprep.mubr.msk.f32.mxu1 %vm611_vm0, %v612_v1  ;;  %522 = vmatpush3.bf16.msra.mxu1 %v521_v20  ;;  %v527_v40 = vpack.c.bf16 %v330_v37, %v329_v36  ;;  %v463_v45 = vld [vmem:[%s775_s7] ss:$0 sm:$0xff]  ;;  %s617_s7 = smov 16  }
  0x1b   :  { %523 = vmatprep.subr.bf16.mxu1 %v610_v0  ;;  %v465_v49 = vld [vmem:[%s777_s9] ss:$0 sm:$0xff]  ;;  %s619_s9 = smov [#allocation5]  }
  0x1c   :  { %s449_s0 = sshll.u32 %s619_s9, 4  ;;  %s450_s0 = int_to_ptr.vmem [resolvable:$true] %s449_s0 }
  0x1d   :  { %s583_s12 = scalar_lea.vmem %s450_s0, 128  ;;  %p588_p9 = scmp.lt.s32.totalorder %s450_s0, %s450_s0 }
  0x1e   :  { %525 = vmatpush3.bf16.msra.mxu1 %v524_v22  ;;  %p584_p8 = scmp.ne.s32.totalorder %s450_s0, %s583_s12  ;;  %p589_p10 = scmp.lt.s32.totalorder %s583_s12, %s583_s12 }
  0x20   :  { %p590_p11 = por %p589_p10, %p588_p9 }
  0x22   :  { %p591_p12 = pnand %p590_p11, %p584_p8 }
  0xec   :  { %v128_v7 = vpop.f32.mrb[0].mxu1 }
  0xed   :  { %v129_v8 = vadd.f32 %v458_v6, %v128_v7  ;;  %v489_v9 = vpop.f32.mrb[1].mxu1 }
  0xef   :  { %543 = vtanh.f32 %v129_v8  ;;  %v460_v11 = vmul.f32 -1.442695, %v129_v8 }
  0xf1   :  { %545 = vpow2.f32 %v460_v11 }
  0xf9   :  { %v544_v10 = vpop.eup %543 }
  0xfa   :  { %140 = vrot.lane.b32.xlu0 %v544_v10, %s613_s2 }
  0xfb   :  { %v546_v12 = vpop.eup %545 }
  0xfc   :  { %v135_v13 = vadd.f32 1.0, %v546_v12 }
  0xfe   :  { %547 = vrcp.f32 %v135_v13 }
 0x108   :  { %v548_v14 = vpop.eup %547 }
 0x16c   :  { %v141_v15 = vpop.permute.xlu0 %140 }
 0x16d   :  { %v143_v16 = vmul.f32 %v548_v14, %v141_v15 }
 0x16f   :  { %549 = vtanh.f32 %v143_v16 }
 0x179   :  { %v550_v23 = vpop.eup %549 }
 0x17a   :  { %146 = vrot.lane.b32.xlu0 %v550_v23, %s614_s18 }
 0x1ec   :  { %v147_v24 = vpop.permute.xlu0 %146 }
 0x1ed   :  { %v149_v25 = vmul.f32 %v548_v14, %v147_v24 }
 0x1ef   :  { %162 = vrot.lane.b32.xlu1 %v149_v25, %s615_s19 }
 0x261   :  { %v163_v26 = vpop.permute.xlu1 %162 }
 0x262   :  { %499 = vmatmul.mubr.msk.f32.vlgmr.msra.gmra.mrb[2].mxu1 %vm164_vm2, %v163_v26 }
 0x335   :  { %v233_v28 = vpop.f32.mrb[2].mxu1 }
 0x336   :  { %v234_v29 = vadd.f32 %v461_v27, %v233_v28  ;;  %v500_v30 = vpop.f32.mrb[3].mxu1 }
 0x338   :  { %v238_v31 = vmul.f32 0.5, %v234_v29 }
 0x33a   :  { %v239_v32 = vmul.f32 1.442695, %v238_v31 }
 0x33c   :  { %551 = vpow2.f32 %v239_v32 }
 0x346   :  { %v552_v34 = vpop.eup %551 }
 0x347   :  { %242 = vrot.lane.b32.xlu1 %v552_v34, %s616_s23 }
 0x3b9   :  { %v243_v38 = vpop.permute.xlu1 %242 }
 0x3ba   :  { %v245_v39 = vmul.f32 %v243_v38, %v237_v35 }
 0x3bc   :  { %v246_v41 = vadd.f32 %v245_v39, %v234_v29 }
 0x3be   :  { %504 = vmatmul.mubr.msk.f32.vlgmr.msra.gmra.mrb[0].mxu0 %vm255_vm3, %v246_v41 }
 0x3bf   :  { %528 = vmatpush3.bf16.msra.mxu0 %v527_v40  ;;  %514 = vmatprep.mubr.msk.f32.mxu0 %vm611_vm0, %v612_v1 }
 0x3c0   :  { %529 = vmatprep.subr.bf16.mxu0 %v610_v0 }
 0x3c3   :  { %531 = vmatpush3.bf16.msra.mxu0 %v530_v44 }
 0x491   :  { %v325_v46 = vpop.f32.mrb[0].mxu0 }
 0x492   :  { %v326_v47 = vadd.f32 %v463_v45, %v325_v46  ;;  %v505_v48 = vpop.f32.mrb[1].mxu0 }
 0x494   :  { %515 = vmatmul.mubr.msk.f32.vlgmr.msra.gmra.mrb[2].mxu0 %vm164_vm2, %v326_v47 }
 0x567   :  { %v409_v50 = vpop.f32.mrb[2].mxu0 }
 0x568   :  { %v410_v51 = vadd.f32 %v465_v49, %v409_v50  ;;  %v516_v52 = vpop.f32.mrb[3].mxu0 }
 0x56a   :  { %553 = vtanh.f32 %v410_v51  ;;  %v467_v54 = vmul.f32 -1.442695, %v410_v51 }
 0x56c   :  { %555 = vpow2.f32 %v467_v54 }
 0x574   :  { %v554_v53 = vpop.eup %553 }
 0x575   :  { %421 = vrot.lane.b32.xlu0 %v554_v53, %s615_s19 }
 0x576   :  { %v556_v55 = vpop.eup %555 }
 0x577   :  { %v416_v56 = vadd.f32 1.0, %v556_v55 }
 0x579   :  { %557 = vrcp.f32 %v416_v56 }
 0x583   :  { %v558_v57 = vpop.eup %557 }
 0x5e7   :  { %v422_v58 = vpop.permute.xlu0 %421 }
 0x5e8   :  { %v424_v59 = vmul.f32 %v558_v57, %v422_v58 }
 0x5ea   :  { %559 = vtanh.f32 %v424_v59 }
 0x5f4   :  { %v560_v60 = vpop.eup %559 }
 0x5f5   :  { %427 = vrot.lane.b32.xlu1 %v560_v60, %s617_s7 }
 0x5f9   :  { %436 = vrot.lane.b32.xlu1 %v234_v29, %s617_s7 }
 0x667   :  { %v428_v61 = vpop.permute.xlu1 %427 }
 0x668   :  { %v430_v62 = vmul.f32 %v558_v57, %v428_v61 }
 0x66a   :  { %432 = vrot.lane.b32.xlu0 %v430_v62, %s618_s8 }
 0x66b   :  { %v437_v63 = vpop.permute.xlu1 %436 }
 0x6dc   :  { %v433_v0 = vpop.permute.xlu0 %432 }
 0x6dd   :  { %v439_v1 = vsel %vm58_vm1, %v433_v0, %v437_v63 }
 0x6de   :  { %v441_v2 = vsel %vm440_vm4, %v439_v1, %v437_v63 }
 0x6df   :  { %442 = vst.msk [vmem:[#allocation5] sm:$0xff] %vm164_vm2, %v441_v2 }
 0x6e0   :  { %594 = shalt.err (!%p591_p12)
}
 0x6e1   :  { %s595_s14 = scalar_lea.hbm %s778_s10, 128 }
 0x6e2   :  { %p596_p13 = scmp.ne.s32.totalorder %s778_s10, %s595_s14  ;;  %p599_p0 = scmp.lt.u32.totalorder %s595_s14, %s778_s10 }
 0x6e4   :  { %p601_p1 = pnand %p599_p0, %p596_p13 }
 0x6e6   :  { %604 = shalt.err (!%p601_p1)
}
 0x6e7   :  { %452 = dma.vmem_to_hbm [thread:$0]  %s450_s0, 128, %s778_s10, [#allocation4]  }
 0x6e8   :  { %607 = dma.done.wait [#allocation4], 128  }
 0x6e9   :  { %608 = vsyncadd [#allocation4], 4294967168 }
 0x6ea   :  { %456 = vsyncpa [#allocation3], 1 }
 0x6eb   :  { %457 = vsyncpa [#allocation4], 1 }

</bundles_post_ra>
